<compile_context>
chip_gen: v5e
topology: v5e:2x2
jax: 0.10.0
libtpu: 0.0.40
codegen_flags: <defaults>
</compile_context>

<pallas_src>
import jax
import jax.numpy as jnp
from jax import lax
from jax.experimental import pallas as pl
from jax.experimental.pallas import tpu as pltpu


# Padded geometry: lane-dense 128-wide feature slabs.
HP = 128            # padded activation / d_in width (lane aligned)
CP = 128            # padded conditioning width (lane aligned)
KP = HP + CP        # contraction depth of the single fused matmul per layer
MAX_TB = 128        # max batch tile (fills MXU rows; keeps n_tb >= 2 for big B)


def _round_up(n, m):
    return ((n + m - 1) // m) * m


# ----------------------------------------------------------------------------
# Pallas kernel: one grid step == the FULL layer chain on one batch tile.
#   carry = [act_bf16 | y_bf16]  (TB, 256) resident in VMEM scratch
#   for l in range(L): act = relu(carry @ W_l + b_l)
# ----------------------------------------------------------------------------
def _fused_chain_kernel(x_ref, y_ref, w_ref, b_ref, o_ref, carry_ref):
    L = w_ref.shape[0]

    # Load x / y into the bf16 carry slab once per batch tile.
    carry_ref[:, :HP] = x_ref[...].astype(jnp.bfloat16)
    carry_ref[:, HP:] = y_ref[...].astype(jnp.bfloat16)

    def layer(l):
        # Single K=KP bf16 matmul (MXU, f32 accumulation) replaces x@Wx + y@Wy.
        acc = jnp.dot(carry_ref[...], w_ref[l],
                      preferred_element_type=jnp.float32)
        return jnp.maximum(acc + b_ref[l], 0.0)      # bias + relu in f32 (VPU)

    # First L-1 layers feed the bf16 carry (activations never leave VMEM).
    def body(l, c):
        carry_ref[:, :HP] = layer(l).astype(jnp.bfloat16)
        return c

    lax.fori_loop(0, L - 1, body, 0, unroll=True)

    # Last layer writes the lane-dense 128-wide output block in f32.
    o_ref[...] = layer(L - 1).astype(o_ref.dtype)


def fused_double_input_chain(x_pad, y_pad, w_stacked, b_stacked, tb):
    """x_pad: (Bp, HP) f32, y_pad: (Bp, CP) f32,
       w_stacked: (L, KP, HP) bf16, b_stacked: (L, 1, HP) f32, tb: batch tile."""
    Bp = x_pad.shape[0]
    L = w_stacked.shape[0]
    n_tb = Bp // tb

    w_bytes = w_stacked.size * 2
    b_bytes = b_stacked.size * 4

    flops = 2 * L * Bp * KP * HP + 2 * L * Bp * HP
    # Weights/bias are VMEM-resident (constant index_map) -> counted once.
    bytes_accessed = (x_pad.size * 4 + y_pad.size * 4 + Bp * HP * 4
                      + w_bytes + b_bytes)

    # VMEM budget: double-buffered x/y/out tiles + resident W/b + bf16 carry.
    tile_bytes = tb * HP * 4
    need = 2 * 3 * tile_bytes + 2 * (w_bytes + b_bytes) + tb * KP * 2
    vmem_limit = min(max(2 * need + (1 << 20), 32 << 20), 100 << 20)

    return pl.pallas_call(
        _fused_chain_kernel,
        out_shape=jax.ShapeDtypeStruct((Bp, HP), jnp.float32),
        grid_spec=pltpu.PrefetchScalarGridSpec(
            num_scalar_prefetch=0,
            grid=(n_tb,),
            in_specs=[
                pl.BlockSpec((tb, HP), lambda i: (i, 0)),          # x tile
                pl.BlockSpec((tb, CP), lambda i: (i, 0)),          # y tile
                pl.BlockSpec((L, KP, HP), lambda i: (0, 0, 0)),    # W (resident)
                pl.BlockSpec((L, 1, HP), lambda i: (0, 0, 0)),     # b (resident)
            ],
            out_specs=pl.BlockSpec((tb, HP), lambda i: (i, 0)),
            scratch_shapes=[pltpu.VMEM((tb, KP), jnp.bfloat16)],   # bf16 carry
        ),
        compiler_params=pltpu.CompilerParams(
            dimension_semantics=("parallel",),   # batch tiles across TCs (v7x)
            vmem_limit_bytes=vmem_limit,
        ),
        cost_estimate=pl.CostEstimate(
            flops=flops, transcendentals=0, bytes_accessed=bytes_accessed),
    )(x_pad, y_pad, w_stacked, b_stacked)


# ----------------------------------------------------------------------------
# Module wrappers (mirror the PyTorch classes)
# ----------------------------------------------------------------------------
class DoubleInputDense:
    """A concrete two-input layer: x <- relu(x @ Wx + y @ Wy + b)."""

    def __init__(self, key, d_in, d_cond, d_out):
        k1, k2, k3 = jax.random.split(key, 3)
        self.d_in, self.d_cond, self.d_out = d_in, d_cond, d_out
        self.wx = jax.random.normal(k1, (d_in, d_out), jnp.float32) * 0.1
        self.wy = jax.random.normal(k2, (d_cond, d_out), jnp.float32) * 0.1
        self.b = jax.random.normal(k3, (1, d_out), jnp.float32) * 0.1


class DoubleInputSequential:
    """Analogue of the PyTorch container; the whole layer chain is fused into
    one Pallas kernel call (activations carried in VMEM scratch, weights
    VMEM-resident across batch tiles)."""

    # TODO(synk): the original container accepts arbitrary nn.Modules; this
    # Pallas version fuses a chain of DoubleInputDense layers specifically.
    # TODO(synk): for very deep chains (L*64KiB of weights > ~24 MiB) the
    # resident-weight plan should fall back to streaming W per layer on v7x.
    def __init__(self, *layers):
        self.layers = list(layers)
        assert len(self.layers) >= 1
        d_cond = self.layers[0].d_cond
        for l in self.layers:
            assert l.d_in <= HP and l.d_out <= HP
            assert l.d_cond == d_cond and d_cond <= CP

        # Pre-pack per-layer weights into lane/sublane-aligned slabs:
        #   W_l = [[Wx_l], [Wy_l]] zero-padded to (KP, HP), stacked over L, bf16.
        w_slabs, b_slabs = [], []
        for l in self.layers:
            w = jnp.zeros((KP, HP), jnp.float32)
            w = w.at[:l.d_in, :l.d_out].set(l.wx)
            w = w.at[HP:HP + l.d_cond, :l.d_out].set(l.wy)
            w_slabs.append(w)
            b_slabs.append(
                jnp.zeros((1, HP), jnp.float32).at[:, :l.d_out].set(l.b))
        self.w_stacked = jnp.stack(w_slabs).astype(jnp.bfloat16)   # (L, KP, HP)
        self.b_stacked = jnp.stack(b_slabs)                        # (L, 1, HP)
        self.d_out = self.layers[-1].d_out

    def forward(self, x, y):
        B = x.shape[0]
        # Large, MXU-filling batch tile; small batches avoid over-padding.
        tb = min(MAX_TB, _round_up(B, 8))
        Bp = _round_up(B, tb)
        x_pad = jnp.zeros((Bp, HP), jnp.float32).at[:B, :x.shape[1]].set(x)
        y_pad = jnp.zeros((Bp, CP), jnp.float32).at[:B, :y.shape[1]].set(y)
        out = fused_double_input_chain(
            x_pad, y_pad, self.w_stacked, self.b_stacked, tb)
        return out[:B, :self.d_out]

    __call__ = forward


# ----------------------------------------------------------------------------
# Reference (pure JAX, same bf16-weight / f32-accumulate math) for checking
# ----------------------------------------------------------------------------
def _ref_forward(layers, x, y):
    y_bf = y.astype(jnp.bfloat16)
    for l in layers:
        acc = jnp.dot(x.astype(jnp.bfloat16), l.wx.astype(jnp.bfloat16),
                      preferred_element_type=jnp.float32)
        acc = acc + jnp.dot(y_bf, l.wy.astype(jnp.bfloat16),
                            preferred_element_type=jnp.float32)
        x = jnp.maximum(acc + l.b, 0.0)
    return x


if __name__ == "__main__":
    B, D_IN, D_COND, HIDDEN = 16, 32, 16, 32

    key = jax.random.PRNGKey(0)
    kx, ky, k0, k1, k2 = jax.random.split(key, 5)

    x = jax.random.normal(kx, (B, D_IN), jnp.float32)
    y = jax.random.normal(ky, (B, D_COND), jnp.float32)

    model = DoubleInputSequential(
        DoubleInputDense(k0, D_IN, D_COND, HIDDEN),
        DoubleInputDense(k1, HIDDEN, D_COND, HIDDEN),
        DoubleInputDense(k2, HIDDEN, D_COND, HIDDEN),
    )

    out = jax.block_until_ready(model(x, y))

    ref = _ref_forward(model.layers, x, y)
    assert out.shape == (B, HIDDEN)
    assert jnp.allclose(out, ref, atol=2e-2, rtol=2e-2), (
        float(jnp.max(jnp.abs(out - ref))))

    print("KERNEL_OK")
</pallas_src>

<mosaic_0001>
module attributes {stable_mosaic.version = 11 : i64} {
  func.func @_fused_chain_kernel(%arg0: i32, %arg1: memref<16x128xf32, #tpu.memory_space<vmem>>, %arg2: memref<16x128xf32, #tpu.memory_space<vmem>>, %arg3: memref<3x256x128xbf16, #tpu.memory_space<vmem>>, %arg4: memref<3x1x128xf32, #tpu.memory_space<vmem>>, %arg5: memref<16x128xf32, #tpu.memory_space<vmem>>, %arg6: memref<16x256xbf16, #tpu.memory_space<vmem>>) attributes {dimension_semantics = [#tpu.dimension_semantics<parallel>], iteration_bounds = array<i64: 1>, scalar_prefetch = 0 : i64, scratch_operands = 1 : i64, tpu.core_type = #tpu.core_type<tc>, window_params = [{transform_indices = @transform_0, window_bounds = array<i64: 16, 128>}, {transform_indices = @transform_1, window_bounds = array<i64: 16, 128>}, {pipeline_mode = #tpu.pipeline_mode<synchronous>, transform_indices = @transform_2, window_bounds = array<i64: 3, 256, 128>}, {pipeline_mode = #tpu.pipeline_mode<synchronous>, transform_indices = @transform_3, window_bounds = array<i64: 3, 1, 128>}, {transform_indices = @transform_4, window_bounds = array<i64: 16, 128>}]} {
    %c0 = arith.constant 0 : index
    %c0_0 = arith.constant 0 : index
    %0 = vector.load %arg1[%c0, %c0_0] : memref<16x128xf32, #tpu.memory_space<vmem>>, vector<16x128xf32>
    %1 = arith.truncf %0 : vector<16x128xf32> to vector<16x128xbf16>
    %c0_1 = arith.constant 0 : index
    %c0_2 = arith.constant 0 : index
    %2 = vector.load %arg6[%c0_1, %c0_2] : memref<16x256xbf16, #tpu.memory_space<vmem>>, vector<16x128xbf16>
    tpu.vector_store %arg6[%c0_1, %c0_2], %1 {strides = array<i32>} : memref<16x256xbf16, #tpu.memory_space<vmem>>, vector<16x128xbf16>,
    %c0_3 = arith.constant 0 : index
    %c0_4 = arith.constant 0 : index
    %3 = vector.load %arg2[%c0_3, %c0_4] : memref<16x128xf32, #tpu.memory_space<vmem>>, vector<16x128xf32>
    %4 = arith.truncf %3 : vector<16x128xf32> to vector<16x128xbf16>
    %c0_5 = arith.constant 0 : index
    %c128 = arith.constant 128 : index
    %5 = vector.load %arg6[%c0_5, %c128] : memref<16x256xbf16, #tpu.memory_space<vmem>>, vector<16x128xbf16>
    tpu.vector_store %arg6[%c0_5, %c128], %4 {strides = array<i32>} : memref<16x256xbf16, #tpu.memory_space<vmem>>, vector<16x128xbf16>,
    %c0_i32 = arith.constant 0 : i32
    %c0_6 = arith.constant 0 : index
    %c0_7 = arith.constant 0 : index
    %6 = vector.load %arg6[%c0_6, %c0_7] : memref<16x256xbf16, #tpu.memory_space<vmem>>, vector<16x256xbf16>
    %7 = arith.index_cast %c0_i32 : i32 to index
    %c0_8 = arith.constant 0 : index
    %c0_9 = arith.constant 0 : index
    %8 = vector.load %arg3[%7, %c0_8, %c0_9] : memref<3x256x128xbf16, #tpu.memory_space<vmem>>, vector<1x256x128xbf16>
    %9 = vector.shape_cast %8 : vector<1x256x128xbf16> to vector<256x128xbf16>
    %cst = arith.constant dense<0.000000e+00> : vector<16x128xf32>
    %10 = tpu.matmul %6, %9, %cst {dimension_numbers = #tpu.dot_dimension_numbers<[1], [0], [0], [1], [0, 0, 1, 1], [], []>} : vector<16x256xbf16>, vector<256x128xbf16>, vector<16x128xf32> -> vector<16x128xf32>
    %11 = arith.index_cast %c0_i32 : i32 to index
    %c0_10 = arith.constant 0 : index
    %c0_11 = arith.constant 0 : index
    %12 = vector.load %arg4[%11, %c0_10, %c0_11] : memref<3x1x128xf32, #tpu.memory_space<vmem>>, vector<1x1x128xf32>
    %13 = vector.shape_cast %12 : vector<1x1x128xf32> to vector<1x128xf32>
    %14 = vector.broadcast %13 : vector<1x128xf32> to vector<16x128xf32>
    %15 = arith.addf %10, %14 : vector<16x128xf32>
    %cst_12 = arith.constant 0.000000e+00 : f32
    %16 = vector.broadcast %cst_12 : f32 to vector<16x128xf32>
    %17 = arith.maximumf %15, %16 : vector<16x128xf32>
    %18 = arith.truncf %17 : vector<16x128xf32> to vector<16x128xbf16>
    %c0_13 = arith.constant 0 : index
    %c0_14 = arith.constant 0 : index
    %19 = vector.load %arg6[%c0_13, %c0_14] : memref<16x256xbf16, #tpu.memory_space<vmem>>, vector<16x128xbf16>
    tpu.vector_store %arg6[%c0_13, %c0_14], %18 {strides = array<i32>} : memref<16x256xbf16, #tpu.memory_space<vmem>>, vector<16x128xbf16>,
    %c1_i32 = arith.constant 1 : i32
    %c0_15 = arith.constant 0 : index
    %c0_16 = arith.constant 0 : index
    %20 = vector.load %arg6[%c0_15, %c0_16] : memref<16x256xbf16, #tpu.memory_space<vmem>>, vector<16x256xbf16>
    %21 = arith.index_cast %c1_i32 : i32 to index
    %c0_17 = arith.constant 0 : index
    %c0_18 = arith.constant 0 : index
    %22 = vector.load %arg3[%21, %c0_17, %c0_18] : memref<3x256x128xbf16, #tpu.memory_space<vmem>>, vector<1x256x128xbf16>
    %23 = vector.shape_cast %22 : vector<1x256x128xbf16> to vector<256x128xbf16>
    %cst_19 = arith.constant dense<0.000000e+00> : vector<16x128xf32>
    %24 = tpu.matmul %20, %23, %cst_19 {dimension_numbers = #tpu.dot_dimension_numbers<[1], [0], [0], [1], [0, 0, 1, 1], [], []>} : vector<16x256xbf16>, vector<256x128xbf16>, vector<16x128xf32> -> vector<16x128xf32>
    %25 = arith.index_cast %c1_i32 : i32 to index
    %c0_20 = arith.constant 0 : index
    %c0_21 = arith.constant 0 : index
    %26 = vector.load %arg4[%25, %c0_20, %c0_21] : memref<3x1x128xf32, #tpu.memory_space<vmem>>, vector<1x1x128xf32>
    %27 = vector.shape_cast %26 : vector<1x1x128xf32> to vector<1x128xf32>
    %28 = vector.broadcast %27 : vector<1x128xf32> to vector<16x128xf32>
    %29 = arith.addf %24, %28 : vector<16x128xf32>
    %cst_22 = arith.constant 0.000000e+00 : f32
    %30 = vector.broadcast %cst_22 : f32 to vector<16x128xf32>
    %31 = arith.maximumf %29, %30 : vector<16x128xf32>
    %32 = arith.truncf %31 : vector<16x128xf32> to vector<16x128xbf16>
    %c0_23 = arith.constant 0 : index
    %c0_24 = arith.constant 0 : index
    %33 = vector.load %arg6[%c0_23, %c0_24] : memref<16x256xbf16, #tpu.memory_space<vmem>>, vector<16x128xbf16>
    tpu.vector_store %arg6[%c0_23, %c0_24], %32 {strides = array<i32>} : memref<16x256xbf16, #tpu.memory_space<vmem>>, vector<16x128xbf16>,
    %c2_i32 = arith.constant 2 : i32
    %c0_25 = arith.constant 0 : index
    %c0_26 = arith.constant 0 : index
    %34 = vector.load %arg6[%c0_25, %c0_26] : memref<16x256xbf16, #tpu.memory_space<vmem>>, vector<16x256xbf16>
    %c2 = arith.constant 2 : index
    %c0_27 = arith.constant 0 : index
    %c0_28 = arith.constant 0 : index
    %35 = vector.load %arg3[%c2, %c0_27, %c0_28] : memref<3x256x128xbf16, #tpu.memory_space<vmem>>, vector<1x256x128xbf16>
    %36 = vector.shape_cast %35 : vector<1x256x128xbf16> to vector<256x128xbf16>
    %cst_29 = arith.constant dense<0.000000e+00> : vector<16x128xf32>
    %37 = tpu.matmul %34, %36, %cst_29 {dimension_numbers = #tpu.dot_dimension_numbers<[1], [0], [0], [1], [0, 0, 1, 1], [], []>} : vector<16x256xbf16>, vector<256x128xbf16>, vector<16x128xf32> -> vector<16x128xf32>
    %c2_30 = arith.constant 2 : index
    %c0_31 = arith.constant 0 : index
    %c0_32 = arith.constant 0 : index
    %38 = vector.load %arg4[%c2_30, %c0_31, %c0_32] : memref<3x1x128xf32, #tpu.memory_space<vmem>>, vector<1x1x128xf32>
    %39 = vector.shape_cast %38 : vector<1x1x128xf32> to vector<1x128xf32>
    %40 = vector.broadcast %39 : vector<1x128xf32> to vector<16x128xf32>
    %41 = arith.addf %37, %40 : vector<16x128xf32>
    %cst_33 = arith.constant 0.000000e+00 : f32
    %42 = vector.broadcast %cst_33 : f32 to vector<16x128xf32>
    %43 = arith.maximumf %41, %42 : vector<16x128xf32>
    %c0_34 = arith.constant 0 : index
    %c0_35 = arith.constant 0 : index
    %44 = vector.load %arg5[%c0_34, %c0_35] : memref<16x128xf32, #tpu.memory_space<vmem>>, vector<16x128xf32>
    tpu.vector_store %arg5[%c0_34, %c0_35], %43 {strides = array<i32>} : memref<16x128xf32, #tpu.memory_space<vmem>>, vector<16x128xf32>,
    return
  }
  func.func @transform_0(%arg0: i32) -> (i32, i32) {
    %c0_i32 = arith.constant 0 : i32
    %c0_i32_0 = arith.constant 0 : i32
    return %arg0, %c0_i32 : i32, i32
  }
  func.func @transform_1(%arg0: i32) -> (i32, i32) {
    %c0_i32 = arith.constant 0 : i32
    %c0_i32_0 = arith.constant 0 : i32
    return %arg0, %c0_i32 : i32, i32
  }
  func.func @transform_2(%arg0: i32) -> (i32, i32, i32) {
    %c0_i32 = arith.constant 0 : i32
    %c0_i32_0 = arith.constant 0 : i32
    %c0_i32_1 = arith.constant 0 : i32
    %c0_i32_2 = arith.constant 0 : i32
    return %c0_i32, %c0_i32_0, %c0_i32_1 : i32, i32, i32
  }
  func.func @transform_3(%arg0: i32) -> (i32, i32, i32) {
    %c0_i32 = arith.constant 0 : i32
    %c0_i32_0 = arith.constant 0 : i32
    %c0_i32_1 = arith.constant 0 : i32
    %c0_i32_2 = arith.constant 0 : i32
    return %c0_i32, %c0_i32_0, %c0_i32_1 : i32, i32, i32
  }
  func.func @transform_4(%arg0: i32) -> (i32, i32) {
    %c0_i32 = arith.constant 0 : i32
    %c0_i32_0 = arith.constant 0 : i32
    return %arg0, %c0_i32 : i32, i32
  }
}

</mosaic_0001>

<bundles_post_ra>
// kernel: tpu_custom_call.1
= control target key start
LH: loop header
LB: loop body
LE: loop exit
PB: predicated region body
PF: predicated region fallthrough
CT: control target
= control target key end

     0   :  { %9 = vsyncpa [#allocation4], 0  ;;  %s1122_s0 = inlined_call_operand.hbm [shape: f32[16,128], index: 0, kind: input, shape index: {}]   ;;  %s1123_s1 = inlined_call_operand.hbm [shape: f32[16,128], index: 1, kind: input, shape index: {}]   ;;  %s1124_s2 = inlined_call_operand.hbm [shape: bf16[3,256,128], index: 2, kind: input, shape index: {}]   ;;  %s1125_s3 = inlined_call_operand.hbm [shape: f32[3,1,128], index: 3, kind: input, shape index: {}]   ;;  %s1126_s4 = inlined_call_operand.hbm [shape: f32[16,128], index: 4, kind: output, shape index: {}]  }
   0x1   :  { %10 = vsyncpa [#allocation7], 0 }
   0x2   :  { %11 = vsyncpa [#allocation10], 0 }
   0x3   :  { %12 = vsyncpa [#allocation5], 0  ;;  %s30_s17 = sshll.u32 %s1123_s1, 4  ;;  %s1062_s18 = smov [#allocation6]   ;;  %s31_s17 = int_to_ptr.hbm [resolvable:$true] %s30_s17 }
   0x4   :  { %s32_s19 = sshll.u32 %s1062_s18, 4  ;;  %s17_s22 = sshll.u32 %s1122_s0, 4  ;;  %s33_s19 = int_to_ptr.vmem [resolvable:$true] %s32_s19  ;;  %s18_s22 = int_to_ptr.hbm [resolvable:$true] %s17_s22 }
   0x5   :  { %s1063_s23 = smov 128   ;;  %s1064_s24 = smov 8  }
   0x6   :  { %38 = dma.hbm_to_vmem [thread:$0]  %s31_s17, 256, %s33_s19, [#allocation7], %s1063_s23, %s1063_s23, %s1064_s24  }
   0x7   :  { %s1065_s25 = smov [#allocation3]   ;;  %s43_s1 = sshll.u32 %s1124_s2, 4  ;;  %s44_s1 = int_to_ptr.hbm [resolvable:$true] %s43_s1 }
   0x8   :  { %s19_s26 = sshll.u32 %s1065_s25, 4  ;;  %s1066_s0 = smov [#allocation8]   ;;  %s20_s26 = int_to_ptr.vmem [resolvable:$true] %s19_s26 }
   0x9   :  { %25 = dma.hbm_to_vmem [thread:$0]  %s18_s22, 256, %s20_s26, [#allocation4], %s1063_s23, %s1063_s23, %s1064_s24  }
   0xa   :  { %s45_s29 = sshll.u32 %s1066_s0, 4  ;;  %s56_s6 = sshll.u32 %s1125_s3, 4  ;;  %s46_s29 = int_to_ptr.vmem [resolvable:$true] %s45_s29  ;;  %s57_s6 = int_to_ptr.hbm [resolvable:$true] %s56_s6 }
   0xb   :  { %s1067_s7 = smov 64   ;;  %s1068_s8 = smov 4  }
   0xc   :  { %51 = dma.hbm_to_vmem [thread:$0]  %s44_s1, 6144, %s46_s29, [#allocation7], %s1067_s7, %s1067_s7, %s1068_s8  }
   0xd   :  { %s1069_s9 = smov [#allocation9]   ;;  %s1070_s2 = smov 16  }
   0xe   :  { %s58_s10 = sshll.u32 %s1069_s9, 4  ;;  %s1071_s11 = smov 1   ;;  %s59_s10 = int_to_ptr.vmem [resolvable:$true] %s58_s10 }
   0xf   :  { %64 = dma.hbm_to_vmem [thread:$0]  %s57_s6, 48, %s59_s10, [#allocation10], %s1070_s2, %s1070_s2, %s1071_s11  }
  0x10   :  { %1054 = dma.done.wait [#allocation4], 256  }
  0x11   :  { %1055 = vsyncadd [#allocation4], 4294967040 }
  0x12   :  { %1056 = dma.done.wait [#allocation7], 6400  }
  0x13   :  { %1057 = vsyncadd [#allocation7], 4294960896 }
  0x14   :  { %1058 = dma.done.wait [#allocation10], 48  }
  0x15   :  { %1059 = vsyncadd [#allocation10], 4294967248  ;;  %v875_v0 = vld [vmem:[#allocation8 + $0x38] sm:$0xff]  ;;  %v874_v2 = vld [vmem:[#allocation8 + $0x30] sm:$0xff]  ;;  %s1072_s3 = smov [#allocation11]   ;;  %s635_s15 = sshll.u32 %s1126_s4, 4  ;;  %s636_s15 = int_to_ptr.hbm [resolvable:$true] %s635_s15 }
  0x16   :  { %v883_v1 = vld [vmem:[#allocation8 + $0x78] sm:$0xff]  ;;  %237 = vmatpush.bf16.msra.mxu0 %v875_v0  ;;  %v882_v3 = vld [vmem:[#allocation8 + $0x70] sm:$0xff]  ;;  %v873_v4 = vld [vmem:[#allocation8 + $0x28] sm:$0xff]  ;;  %s633_s12 = sshll.u32 %s1072_s3, 4  ;;  %s634_s12 = int_to_ptr.vmem [resolvable:$true] %s633_s12 }
  0x17   :  { %251 = vmatpush.bf16.msra.mxu1 %v883_v1  ;;  %v881_v5 = vld [vmem:[#allocation8 + $0x68] sm:$0xff]  ;;  %v81_v6 = vld [vmem:[#allocation3] sm:$0xff]  ;;  %v87_v10 = vld [vmem:[#allocation6] sm:$0xff] }
  0x18   :  { %v82_v7 = vld [vmem:[#allocation3 + $0x8] sm:$0xff]  ;;  %v83_v8 = vpack.c.bf16 %v81_v6, %v81_v6  ;;  %v88_v11 = vld [vmem:[#allocation6 + $0x8] sm:$0xff]  ;;  %v89_v13 = vpack.c.bf16 %v87_v10, %v87_v10  ;;  %v900_v16 = vld [vmem:[#allocation8 + $0xf0] sm:$0xff] }
  0x19   :  { %v84_v9 = vpack.c.bf16 %v82_v7, %v82_v7  ;;  %v901_v12 = vld [vmem:[#allocation8 + $0xf8] sm:$0xff]  ;;  %v90_v14 = vpack.c.bf16 %v88_v11, %v88_v11  ;;  %v872_v17 = vld [vmem:[#allocation8 + $0x20] sm:$0xff]  ;;  %v899_v19 = vld [vmem:[#allocation8 + $0xe8] sm:$0xff] }
  0x1a   :  { %238 = vmatpush.bf16.msra.mxu0 %v874_v2  ;;  %v893_v15 = vld [vmem:[#allocation8 + $0xb8] sm:$0xff]  ;;  %85 = vst [vmem:[#allocation2] sm:$0xf] %v83_v8  ;;  %431 = vmatpush.bf16.msra.mxu3 %v901_v12  ;;  %v880_v18 = vld [vmem:[#allocation8 + $0x60] sm:$0xff]  ;;  %v870_v22 = vld [vmem:[#allocation8 + $0x10] sm:$0xff] }
  0x1b   :  { %252 = vmatpush.bf16.msra.mxu1 %v882_v3  ;;  %86 = vst [vmem:[#allocation2 + $0x8] sm:$0xf] %v84_v9  ;;  %417 = vmatpush.bf16.msra.mxu2 %v893_v15  ;;  %v871_v20 = vld [vmem:[#allocation8 + $0x18] sm:$0xff]  ;;  %v878_v23 = vld [vmem:[#allocation8 + $0x50] sm:$0xff]  ;;  %v869_v24 = vld [vmem:[#allocation8 + $0x8] sm:$0xff] }
  0x1c   :  { %91 = vst [vmem:[#allocation2 + $0x4] sm:$0xf] %v89_v13  ;;  %v879_v21 = vld [vmem:[#allocation8 + $0x58] sm:$0xff]  ;;  %v877_v25 = vld [vmem:[#allocation8 + $0x48] sm:$0xff]  ;;  %v868_v26 = vld [vmem:[#allocation8] sm:$0xff] }
  0x1d   :  { %92 = vst [vmem:[#allocation2 + $0xc] sm:$0xf] %v90_v14  ;;  %v876_v27 = vld [vmem:[#allocation8 + $0x40] sm:$0xff]  ;;  %v892_v34 = vld [vmem:[#allocation8 + $0xb0] sm:$0xff]  ;;  %v891_v36 = vld [vmem:[#allocation8 + $0xa8] sm:$0xff] }
  0x1e   :  { %239 = vmatpush.bf16.msra.mxu0 %v873_v4  ;;  %432 = vmatpush.bf16.msra.mxu3 %v900_v16  ;;  %v898_v35 = vld [vmem:[#allocation8 + $0xe0] sm:$0xff]  ;;  %v897_v37 = vld [vmem:[#allocation8 + $0xd8] sm:$0xff]  ;;  %v896_v39 = vld [vmem:[#allocation8 + $0xd0] sm:$0xff] }
  0x1f   :  { %253 = vmatpush.bf16.msra.mxu1 %v881_v5  ;;  %418 = vmatpush.bf16.msra.mxu2 %v892_v34  ;;  %v890_v38 = vld [vmem:[#allocation8 + $0xa0] sm:$0xff]  ;;  %v889_v40 = vld [vmem:[#allocation8 + $0x98] sm:$0xff]  ;;  %v895_v41 = vld [vmem:[#allocation8 + $0xc8] sm:$0xff] }
  0x20   :  { %v888_v42 = vld [vmem:[#allocation8 + $0x90] sm:$0xff]  ;;  %v894_v43 = vld [vmem:[#allocation8 + $0xc0] sm:$0xff]  ;;  %v887_v44 = vld [vmem:[#allocation8 + $0x88] sm:$0xff] }
  0x21   :  { %v652_v28 = vld [vmem:[#allocation2] sm:$0xf]  ;;  %v886_v48 = vld [vmem:[#allocation8 + $0x80] sm:$0xff]  ;;  %v919_v49 = vld [vmem:[#allocation8 + $0x178] sm:$0xff] }
  0x22   :  { %240 = vmatpush.bf16.msra.mxu0 %v872_v17  ;;  %433 = vmatpush.bf16.msra.mxu3 %v899_v19  ;;  %v867_v29 = vld [vmem:[#allocation2 + $0x4] sm:$0xf0]  ;;  %v931_v50 = vld [vmem:[#allocation9] ss:$0 sm:$0xff]  ;;  %v918_v2 = vld [vmem:[#allocation8 + $0x170] sm:$0xff] }
  0x23   :  { %254 = vmatpush.bf16.msra.mxu1 %v880_v18  ;;  %v866_v30 = vld [vmem:[#allocation2 + $0x4] sm:$0xf]  ;;  %v653_v32 = vor.u32 %v867_v29, %v652_v28  ;;  %419 = vmatpush.bf16.msra.mxu2 %v891_v36  ;;  %v911_v3 = vld [vmem:[#allocation8 + $0x138] sm:$0xff]  ;;  %v917_v4 = vld [vmem:[#allocation8 + $0x168] sm:$0xff] }
  0x24   :  { %v654_v31 = vld [vmem:[#allocation2 + $0x8] sm:$0xf0]  ;;  %v884_v45 = vld [vmem:[#allocation2 + $0x4] sm:$0xf]  ;;  %v916_v6 = vld [vmem:[#allocation8 + $0x160] sm:$0xff] }
  0x25   :  { %v657_v33 = vor.u32 %v866_v30, %v654_v31  ;;  %v726_v46 = vld [vmem:[#allocation2 + $0x8] sm:$0xf0]  ;;  %v910_v5 = vld [vmem:[#allocation8 + $0x130] sm:$0xff]  ;;  %v909_v7 = vld [vmem:[#allocation8 + $0x128] sm:$0xff] }
  0x26   :  { %241 = vmatpush.bf16.msra.mxu0 %v871_v20  ;;  %434 = vmatpush.bf16.msra.mxu3 %v898_v35  ;;  %v729_v47 = vor.u32 %v884_v45, %v726_v46  ;;  %v915_v8 = vld [vmem:[#allocation8 + $0x158] sm:$0xff]  ;;  %v908_v9 = vld [vmem:[#allocation8 + $0x120] sm:$0xff]  ;;  %v914_v10 = vld [vmem:[#allocation8 + $0x150] sm:$0xff] }
  0x27   :  { %255 = vmatpush.bf16.msra.mxu1 %v879_v21  ;;  %420 = vmatpush.bf16.msra.mxu2 %v890_v38  ;;  %v907_v11 = vld [vmem:[#allocation8 + $0x118] sm:$0xff]  ;;  %v913_v12 = vld [vmem:[#allocation8 + $0x148] sm:$0xff]  ;;  %v906_v13 = vld [vmem:[#allocation8 + $0x110] sm:$0xff] }
  0x28   :  { %v912_v14 = vld [vmem:[#allocation8 + $0x140] sm:$0xff]  ;;  %v905_v15 = vld [vmem:[#allocation8 + $0x108] sm:$0xff]  ;;  %v902_v16 = vld [vmem:[#allocation2 + $0x4] sm:$0xf] }
  0x29   :  { %v798_v17 = vld [vmem:[#allocation2 + $0x8] sm:$0xf0]  ;;  %v904_v19 = vld [vmem:[#allocation8 + $0x100] sm:$0xff] }
  0x2a   :  { %242 = vmatpush.bf16.msra.mxu0 %v870_v22  ;;  %435 = vmatpush.bf16.msra.mxu3 %v897_v37  ;;  %v801_v18 = vor.u32 %v902_v16, %v798_v17  ;;  %v932_v20 = vld [vmem:[#allocation9 + $0x1] ss:$0 sm:$0xff]  ;;  %v933_v36 = vld [vmem:[#allocation9 + $0x2] ss:$0 sm:$0xff] }
  0x2b   :  { %256 = vmatpush.bf16.msra.mxu1 %v878_v23  ;;  %421 = vmatpush.bf16.msra.mxu2 %v889_v40 }
  0x2e   :  { %243 = vmatpush.bf16.msra.mxu0 %v869_v24  ;;  %436 = vmatpush.bf16.msra.mxu3 %v896_v39 }
  0x2f   :  { %257 = vmatpush.bf16.msra.mxu1 %v877_v25  ;;  %422 = vmatpush.bf16.msra.mxu2 %v888_v42 }
  0x32   :  { %244 = vmatpush.bf16.msra.mxu0 %v868_v26  ;;  %437 = vmatpush.bf16.msra.mxu3 %v895_v41 }
  0x33   :  { %258 = vmatpush.bf16.msra.mxu1 %v876_v27  ;;  %423 = vmatpush.bf16.msra.mxu2 %v887_v44 }
  0x35   :  { %245 = vmatmul.bf16.vlgmr.msra.gmra.mxu0 %v653_v32 }
  0x36   :  { %259 = vmatmul.bf16.vlgmr.msra.gmra.mxu1 %v657_v33  ;;  %438 = vmatpush.bf16.msra.mxu3 %v894_v43 }
  0x37   :  { %424 = vmatpush.bf16.msra.mxu2 %v886_v48  ;;  %611 = vmatpush.bf16.msrb.mxu1 %v919_v49 }
  0x38   :  { %597 = vmatpush.bf16.msrb.mxu0 %v911_v3 }
  0x39   :  { %439 = vmatmul.bf16.vlgmr.msra.gmra.mxu3 %v729_v47 }
  0x3b   :  { %612 = vmatpush.bf16.msrb.mxu1 %v918_v2 }
  0x3c   :  { %598 = vmatpush.bf16.msrb.mxu0 %v910_v5 }
  0x3f   :  { %613 = vmatpush.bf16.msrb.mxu1 %v917_v4 }
  0x40   :  { %599 = vmatpush.bf16.msrb.mxu0 %v909_v7 }
  0x43   :  { %614 = vmatpush.bf16.msrb.mxu1 %v916_v6 }
  0x44   :  { %600 = vmatpush.bf16.msrb.mxu0 %v908_v9 }
  0x47   :  { %615 = vmatpush.bf16.msrb.mxu1 %v915_v8 }
  0x48   :  { %601 = vmatpush.bf16.msrb.mxu0 %v907_v11 }
  0x4b   :  { %616 = vmatpush.bf16.msrb.mxu1 %v914_v10 }
  0x4c   :  { %602 = vmatpush.bf16.msrb.mxu0 %v906_v13 }
  0x4f   :  { %617 = vmatpush.bf16.msrb.mxu1 %v913_v12 }
  0x50   :  { %603 = vmatpush.bf16.msrb.mxu0 %v905_v15 }
  0x53   :  { %618 = vmatpush.bf16.msrb.mxu1 %v912_v14 }
  0x54   :  { %604 = vmatpush.bf16.msrb.mxu0 %v904_v19 }
  0x56   :  { %619 = vmatmul.bf16.vlgmr.msrb.gmra.mxu1 %v801_v18 }
  0xb2   :  { %v246_v51 = vpop.f32.mrf.mxu0 }
  0xb3   :  { %v260_v52 = vpop.f32.mrf.mxu1  ;;  %v247_v53 = vadd.f32 %v931_v50, %v246_v51 }
  0xb5   :  { %v261_v54 = vadd.f32 %v260_v52, %v247_v53 }
  0xb7   :  { %v265_v55 = vmax.f32 %v261_v54, 0.0 }
  0xb9   :  { %v267_v56 = vpack.c.bf16 %v265_v55, %v265_v55 }
  0xba   :  { %v248_v57 = vpop.f32.mrf.mxu0 }
  0xbb   :  { %269 = vst [vmem:[#allocation2] sm:$0xf] %v267_v56  ;;  %v249_v58 = vadd.f32 %v931_v50, %v248_v57  ;;  %v262_v59 = vpop.f32.mrf.mxu1 }
  0xbc   :  { %v440_v21 = vpop.f32.mrf.mxu3 }
  0xbd   :  { %v263_v60 = vadd.f32 %v262_v59, %v249_v58 }
  0xbf   :  { %v266_v61 = vmax.f32 %v263_v60, 0.0 }
  0xc1   :  { %v268_v62 = vpack.c.bf16 %v266_v61, %v266_v61 }
  0xc2   :  { %v724_v63 = vld [vmem:[#allocation2] sm:$0xf] }
  0xc3   :  { %270 = vst [vmem:[#allocation2 + $0x8] sm:$0xf] %v268_v62 }
  0xc4   :  { %v442_v29 = vpop.f32.mrf.mxu3 }
  0xca   :  { %v885_v0 = vld [vmem:[#allocation2 + $0x4] sm:$0xf0] }
  0xcb   :  { %v725_v1 = vor.u32 %v885_v0, %v724_v63 }
  0xcd   :  { %425 = vmatmul.bf16.vlgmr.msra.gmra.mxu2 %v725_v1 }
  0xd3   :  { %v620_v37 = vpop.f32.mrf.mxu1 }
  0xdb   :  { %v622_v44 = vpop.f32.mrf.mxu1 }
 0x150   :  { %v426_v22 = vpop.f32.mrf.mxu2 }
 0x151   :  { %v427_v23 = vadd.f32 %v932_v20, %v426_v22 }
 0x153   :  { %v441_v24 = vadd.f32 %v440_v21, %v427_v23 }
 0x155   :  { %v445_v25 = vmax.f32 %v441_v24, 0.0 }
 0x157   :  { %v447_v26 = vpack.c.bf16 %v445_v25, %v445_v25 }
 0x158   :  { %v428_v27 = vpop.f32.mrf.mxu2 }
 0x159   :  { %449 = vst [vmem:[#allocation2] sm:$0xf] %v447_v26  ;;  %v429_v28 = vadd.f32 %v932_v20, %v428_v27 }
 0x15b   :  { %v443_v30 = vadd.f32 %v442_v29, %v429_v28 }
 0x15d   :  { %v446_v31 = vmax.f32 %v443_v30, 0.0 }
 0x15f   :  { %v448_v32 = vpack.c.bf16 %v446_v31, %v446_v31 }
 0x160   :  { %v796_v33 = vld [vmem:[#allocation2] sm:$0xf] }
 0x161   :  { %450 = vst [vmem:[#allocation2 + $0x8] sm:$0xf] %v448_v32 }
 0x168   :  { %v903_v34 = vld [vmem:[#allocation2 + $0x4] sm:$0xf0] }
 0x169   :  { %v797_v35 = vor.u32 %v903_v34, %v796_v33 }
 0x16b   :  { %605 = vmatmul.bf16.vlgmr.msrb.gmra.mxu0 %v797_v35 }
 0x1e8   :  { %v606_v38 = vpop.f32.mrf.mxu0 }
 0x1e9   :  { %v607_v39 = vadd.f32 %v933_v36, %v606_v38 }
 0x1eb   :  { %v621_v40 = vadd.f32 %v620_v37, %v607_v39 }
 0x1ed   :  { %v625_v41 = vmax.f32 %v621_v40, 0.0 }
 0x1ef   :  { %627 = vst [vmem:[#allocation11] sm:$0xff] %v625_v41 }
 0x1f0   :  { %v608_v42 = vpop.f32.mrf.mxu0 }
 0x1f1   :  { %v609_v43 = vadd.f32 %v933_v36, %v608_v42 }
 0x1f3   :  { %v623_v45 = vadd.f32 %v622_v44, %v609_v43 }
 0x1f5   :  { %v626_v46 = vmax.f32 %v623_v45, 0.0 }
 0x1f7   :  { %628 = vst [vmem:[#allocation11 + $0x8] sm:$0xff] %v626_v46 }
 0x1f8   :  { %641 = dma.vmem_to_hbm [thread:$0]  %s634_s12, 256, %s636_s15, [#allocation5], %s1063_s23, %s1063_s23, %s1064_s24  }
 0x1f9   :  { %1060 = dma.done.wait [#allocation5], 256  }
 0x1fa   :  { %1061 = vsyncadd [#allocation5], 4294967040 }
 0x1fb   :  { %646 = vsyncpa [#allocation4], 1 }
 0x1fc   :  { %647 = vsyncpa [#allocation7], 1 }
 0x1fd   :  { %648 = vsyncpa [#allocation10], 1 }
 0x1fe   :  { %649 = vsyncpa [#allocation5], 1 }

</bundles_post_ra>
